<compile_context>
chip_gen: v5e
topology: v5e:2x2
jax: 0.10.0
libtpu: 0.0.40
codegen_flags: <defaults>
</compile_context>

<pallas_src>
import functools

import jax
import jax.numpy as jnp
from jax import lax
from jax.experimental import pallas as pl
from jax.experimental.pallas import tpu as pltpu


def _round_up(n, m):
    return ((n + m - 1) // m) * m


def _vmem_budget_bytes():
    """Per-TensorCore VMEM budget with headroom for Mosaic internals."""
    cap = None
    try:
        cap = getattr(pltpu.get_tpu_info(), "vmem_capacity_bytes", None)
    except Exception:
        cap = None
    if not cap:
        cap = 64 << 20          # conservative: v7x physical VMEM per TC
    return (int(cap) * 3) // 4  # leave 25% headroom


# ----------------------------- kernels --------------------------------------


def _logreg_kernel(x_ref, w_ref, b_ref, o_ref):
    # x: (TB, D_in) input-dtype, w: (D_in, D_out) bf16 (pre-transposed, resident),
    # b: (1, D_out) f32 (resident), o: (TB, D_out) input-dtype.
    xb = x_ref[...].astype(jnp.bfloat16)              # VPU cast, hidden under DMA
    z = jnp.dot(xb, w_ref[...], preferred_element_type=jnp.float32)
    z = z + b_ref[...]                                # f32 bias add
    o_ref[...] = jax.nn.sigmoid(z).astype(o_ref.dtype)


def _logreg_kernel_ktiled(x_ref, w_ref, b_ref, o_ref, acc_ref, *, d_in, tk):
    # Grid = (batch tiles, K tiles); K is innermost / "arbitrary".
    k = pl.program_id(1)

    @pl.when(k == 0)
    def _init():
        acc_ref[...] = jnp.zeros_like(acc_ref)

    xb = x_ref[...]
    if d_in % tk != 0:
        # Last K tile is partial: zero out-of-range columns with a select so any
        # NaN/Inf garbage from the OOB block read cannot reach the accumulator
        # (the weight's padded K rows are exact zeros from the wrapper).
        col = lax.broadcasted_iota(jnp.int32, xb.shape, 1) + k * tk
        xb = jnp.where(col < d_in, xb, 0.0)

    acc_ref[...] += jnp.dot(xb.astype(jnp.bfloat16), w_ref[...],
                            preferred_element_type=jnp.float32)

    @pl.when(k == pl.num_programs(1) - 1)
    def _finalize():
        z = acc_ref[...] + b_ref[...]
        o_ref[...] = jax.nn.sigmoid(z).astype(o_ref.dtype)


# ----------------------------- wrapper ---------------------------------------


def logistic_regression(x, weight, bias, *, block_k=2048, force_k_tiling=False):
    """sigmoid(x @ weight.T + bias).

    x: (B, D_in); weight: (D_out, D_in) (PyTorch layout); bias: (D_out,).
    """
    B, D_in = x.shape
    D_out, d_in_w = weight.shape
    assert d_in_w == D_in, "weight shape must be (D_out, D_in)"

    out_dtype = x.dtype
    budget = _vmem_budget_bytes()

    # Bias as a (1, D_out) f32 row (resident in VMEM).
    b2 = bias.reshape(1, D_out).astype(jnp.float32)

    # VMEM footprint estimates (layouts pad to (8,128)/(16,128) tiles).
    d_out_vmem = _round_up(D_out, 128)
    w_resident_bytes = _round_up(D_in, 16) * d_out_vmem * 2           # bf16 weight
    per_row_bytes = 2 * _round_up(D_in, 128) * 4 + 2 * d_out_vmem * 4  # 2x x + 2x out

    avail = budget - w_resident_bytes - (2 << 20)
    tb_fit = avail // per_row_bytes if avail > 0 else 0
    use_k_tiling = force_k_tiling or tb_fit < 8

    if not use_k_tiling:
        # ------- fast path: whole K per step, weight resident in VMEM -------
        tb = min(int(tb_fit), 2048)             # per-step overhead amortized well before this
        tb = B if tb >= B else (tb // 8) * 8    # full-dim block, or multiple of 8

        # Fold the transpose into the one-time bf16 cast copy (small).
        w_t = weight.T.astype(jnp.bfloat16)     # (D_in, D_out)

        grid = (pl.cdiv(B, tb),)
        est = w_resident_bytes + tb * per_row_bytes + (2 << 20)

        return pl.pallas_call(
            _logreg_kernel,
            out_shape=jax.ShapeDtypeStruct((B, D_out), out_dtype),
            grid_spec=pltpu.PrefetchScalarGridSpec(
                num_scalar_prefetch=0,
                grid=grid,
                in_specs=[
                    # x: streamed batch tiles, double-buffered by the pipeline.
                    pl.BlockSpec((tb, D_in), lambda i: (i, 0)),
                    # weight: VMEM-resident across the whole grid.
                    pl.BlockSpec((D_in, D_out), lambda i: (0, 0)),
                    # bias: VMEM-resident.
                    pl.BlockSpec((1, D_out), lambda i: (0, 0)),
                ],
                out_specs=pl.BlockSpec((tb, D_out), lambda i: (i, 0)),
            ),
            compiler_params=pltpu.CompilerParams(
                # Independent batch tiles -> shard across TensorCores on v7x.
                dimension_semantics=("parallel",),
                vmem_limit_bytes=int(max(32 << 20, est + (4 << 20))),
            ),
        )(x, w_t, b2)

    # ------- K-tiled path: D_in too large for a resident weight -------------
    tk = min(_round_up(D_in, 128), _round_up(block_k, 128))
    d_in_p = _round_up(D_in, tk)

    # Zero-pad only the (small, one-time) transposed weight along K; x is passed
    # unmodified and the partial last K tile is masked inside the kernel.
    w_t = jnp.zeros((d_in_p, D_out), jnp.bfloat16).at[:D_in, :].set(
        weight.T.astype(jnp.bfloat16))

    w_block_bytes = 2 * tk * d_out_vmem * 2                     # double-buffered bf16 W blocks
    per_row_bytes_k = 2 * tk * 4 + 2 * d_out_vmem * 4 + d_out_vmem * 4  # x, out, acc
    avail = budget - w_block_bytes - (2 << 20)
    tb = max(8, min(2048, avail // per_row_bytes_k if avail > 0 else 8))
    tb = B if tb >= B else (tb // 8) * 8

    grid = (pl.cdiv(B, tb), pl.cdiv(D_in, tk))   # K innermost ("arbitrary")
    est = w_block_bytes + tb * per_row_bytes_k + (2 << 20)

    kernel = functools.partial(_logreg_kernel_ktiled, d_in=D_in, tk=tk)
    return pl.pallas_call(
        kernel,
        out_shape=jax.ShapeDtypeStruct((B, D_out), out_dtype),
        grid_spec=pltpu.PrefetchScalarGridSpec(
            num_scalar_prefetch=0,
            grid=grid,
            in_specs=[
                pl.BlockSpec((tb, tk), lambda i, k: (i, k)),      # x tiles
                pl.BlockSpec((tk, D_out), lambda i, k: (k, 0)),   # weight K-slabs
                pl.BlockSpec((1, D_out), lambda i, k: (0, 0)),    # bias resident
            ],
            out_specs=pl.BlockSpec((tb, D_out), lambda i, k: (i, 0)),
            scratch_shapes=[pltpu.VMEM((tb, D_out), jnp.float32)],
        ),
        compiler_params=pltpu.CompilerParams(
            dimension_semantics=("parallel", "arbitrary"),
            vmem_limit_bytes=int(max(32 << 20, est + (4 << 20))),
        ),
    )(x, w_t, b2)


if __name__ == "__main__":
    # Small shapes consistent with the module: batch=8, input_dim=32, output_dim=16
    batch, input_dim, output_dim = 8, 32, 16

    key = jax.random.PRNGKey(0)
    k_x, k_w, k_b = jax.random.split(key, 3)

    # Deterministic init mimicking nn.Linear default: U(-1/sqrt(in), 1/sqrt(in))
    bound = 1.0 / (input_dim ** 0.5)
    weight = jax.random.uniform(k_w, (output_dim, input_dim), jnp.float32,
                                minval=-bound, maxval=bound)
    bias = jax.random.uniform(k_b, (output_dim,), jnp.float32,
                              minval=-bound, maxval=bound)
    x = jax.random.normal(k_x, (batch, input_dim), jnp.float32)

    out = jax.block_until_ready(logistic_regression(x, weight, bias))

    # Reference check in plain JAX (f32). bf16 MXU inputs -> loosened tolerance.
    ref = jax.nn.sigmoid(x @ weight.T + bias)
    assert out.shape == (batch, output_dim)
    assert jnp.allclose(out, ref, atol=2e-2, rtol=2e-2)

    # Tighter check against a bf16-matched reference (same matmul precision).
    ref_bf16 = jax.nn.sigmoid(
        jnp.dot(x.astype(jnp.bfloat16), weight.astype(jnp.bfloat16).T,
                preferred_element_type=jnp.float32) + bias)
    assert jnp.allclose(out, ref_bf16, atol=1e-4, rtol=1e-4)

    # Exercise the K-tiled fallback (forced) including the partial-K mask path.
    input_dim2 = 200
    k_x2, k_w2, k_b2 = jax.random.split(jax.random.PRNGKey(1), 3)
    bound2 = 1.0 / (input_dim2 ** 0.5)
    w2 = jax.random.uniform(k_w2, (output_dim, input_dim2), jnp.float32,
                            minval=-bound2, maxval=bound2)
    b2v = jax.random.uniform(k_b2, (output_dim,), jnp.float32,
                             minval=-bound2, maxval=bound2)
    x2 = jax.random.normal(k_x2, (batch, input_dim2), jnp.float32)
    out2 = jax.block_until_ready(
        logistic_regression(x2, w2, b2v, block_k=128, force_k_tiling=True))
    ref2 = jax.nn.sigmoid(x2 @ w2.T + b2v)
    assert out2.shape == (batch, output_dim)
    assert jnp.allclose(out2, ref2, atol=2e-2, rtol=2e-2)

    print("KERNEL_OK")
</pallas_src>

<mosaic_0001>
module attributes {stable_mosaic.version = 11 : i64} {
  func.func @_logreg_kernel(%arg0: i32, %arg1: memref<8x32xf32, #tpu.memory_space<vmem>>, %arg2: memref<32x16xbf16, #tpu.memory_space<vmem>>, %arg3: memref<1x16xf32, #tpu.memory_space<vmem>>, %arg4: memref<8x16xf32, #tpu.memory_space<vmem>>) attributes {dimension_semantics = [#tpu.dimension_semantics<parallel>], iteration_bounds = array<i64: 1>, scalar_prefetch = 0 : i64, scratch_operands = 0 : i64, tpu.core_type = #tpu.core_type<tc>, window_params = [{transform_indices = @transform_0, window_bounds = array<i64: 8, 32>}, {pipeline_mode = #tpu.pipeline_mode<synchronous>, transform_indices = @transform_1, window_bounds = array<i64: 32, 16>}, {pipeline_mode = #tpu.pipeline_mode<synchronous>, transform_indices = @transform_2, window_bounds = array<i64: 1, 16>}, {transform_indices = @transform_3, window_bounds = array<i64: 8, 16>}]} {
    %c0 = arith.constant 0 : index
    %c0_0 = arith.constant 0 : index
    %0 = vector.load %arg1[%c0, %c0_0] : memref<8x32xf32, #tpu.memory_space<vmem>>, vector<8x32xf32>
    %1 = arith.truncf %0 : vector<8x32xf32> to vector<8x32xbf16>
    %c0_1 = arith.constant 0 : index
    %c0_2 = arith.constant 0 : index
    %2 = vector.load %arg2[%c0_1, %c0_2] : memref<32x16xbf16, #tpu.memory_space<vmem>>, vector<32x16xbf16>
    %cst = arith.constant dense<0.000000e+00> : vector<8x16xf32>
    %3 = tpu.matmul %1, %2, %cst {dimension_numbers = #tpu.dot_dimension_numbers<[1], [0], [0], [1], [0, 0, 1, 1], [], []>} : vector<8x32xbf16>, vector<32x16xbf16>, vector<8x16xf32> -> vector<8x16xf32>
    %c0_3 = arith.constant 0 : index
    %c0_4 = arith.constant 0 : index
    %4 = vector.load %arg3[%c0_3, %c0_4] : memref<1x16xf32, #tpu.memory_space<vmem>>, vector<1x16xf32>
    %5 = vector.broadcast %4 : vector<1x16xf32> to vector<8x16xf32>
    %6 = arith.addf %3, %5 : vector<8x16xf32>
    %7 = arith.negf %6 : vector<8x16xf32>
    %8 = math.exp %7 : vector<8x16xf32>
    %cst_5 = arith.constant 1.000000e+00 : f32
    %9 = vector.broadcast %cst_5 : f32 to vector<8x16xf32>
    %10 = arith.addf %9, %8 : vector<8x16xf32>
    %11 = arith.divf %9, %10 : vector<8x16xf32>
    %c0_6 = arith.constant 0 : index
    %c0_7 = arith.constant 0 : index
    %12 = vector.load %arg4[%c0_6, %c0_7] : memref<8x16xf32, #tpu.memory_space<vmem>>, vector<8x16xf32>
    tpu.vector_store %arg4[%c0_6, %c0_7], %11 {strides = array<i32>} : memref<8x16xf32, #tpu.memory_space<vmem>>, vector<8x16xf32>,
    return
  }
  func.func @transform_0(%arg0: i32) -> (i32, i32) {
    %c0_i32 = arith.constant 0 : i32
    %c0_i32_0 = arith.constant 0 : i32
    return %arg0, %c0_i32 : i32, i32
  }
  func.func @transform_1(%arg0: i32) -> (i32, i32) {
    %c0_i32 = arith.constant 0 : i32
    %c0_i32_0 = arith.constant 0 : i32
    %c0_i32_1 = arith.constant 0 : i32
    return %c0_i32, %c0_i32_0 : i32, i32
  }
  func.func @transform_2(%arg0: i32) -> (i32, i32) {
    %c0_i32 = arith.constant 0 : i32
    %c0_i32_0 = arith.constant 0 : i32
    %c0_i32_1 = arith.constant 0 : i32
    return %c0_i32, %c0_i32_0 : i32, i32
  }
  func.func @transform_3(%arg0: i32) -> (i32, i32) {
    %c0_i32 = arith.constant 0 : i32
    %c0_i32_0 = arith.constant 0 : i32
    return %arg0, %c0_i32 : i32, i32
  }
}

</mosaic_0001>

<bundles_post_ra>
// kernel: tpu_custom_call.1
= control target key start
LH: loop header
LB: loop body
LE: loop exit
PB: predicated region body
PF: predicated region fallthrough
CT: control target
= control target key end

     0   :  { %s172_s0 = inlined_call_operand.vmem [shape: f32[8,32], index: 0, kind: input, shape index: {}]   ;;  %s173_s1 = inlined_call_operand.vmem [shape: bf16[32,16], index: 1, kind: input, shape index: {}]   ;;  %s174_s2 = inlined_call_operand.vmem [shape: f32[1,16], index: 2, kind: input, shape index: {}]   ;;  %s175_s3 = inlined_call_operand.hbm [shape: f32[8,16], index: 3, kind: output, shape index: {}]  }
   0x1   :  { %v103_v0 = vld [vmem:[%s173_s1 + $0x8] sm:$0xff] }
   0x2   :  { %8 = vsyncpa [#allocation3], 0  ;;  %48 = vmatpush.bf16.msra.mxu0 %v103_v0  ;;  %v102_v1 = vld [vmem:[%s173_s1] sm:$0xff]  ;;  %vm38_vm0 = vcmask 261120   ;;  %vm74_vm4 = vcmask 130048  }
   0x3   :  { %v16_v2 = vld [vmem:[%s172_s0] sm:$0xff]  ;;  %s136_s0 = smov [#allocation2]  }
   0x4   :  { %v17_v3 = vpack.c.bf16 %v16_v2, %v16_v2  ;;  %v105_v4 = vld [vmem:[%s174_s2] ss:$0 sm:$0xff]  ;;  %s81_s1 = sshll.u32 %s136_s0, 4  ;;  %s83_s2 = sshll.u32 %s175_s3, 4  ;;  %s82_s1 = int_to_ptr.vmem [resolvable:$true] %s81_s1  ;;  %s84_s2 = int_to_ptr.hbm [resolvable:$true] %s83_s2 }
   0x6   :  { %49 = vmatpush.bf16.msra.mxu0 %v102_v1 }
   0x9   :  { %100 = vmatmul.msk.bf16.vlgmr.msra.gmra.mxu0 %vm38_vm0, %v17_v3 }
  0x86   :  { %v51_v5 = vpop.f32.mrf.mxu0 }
  0x87   :  { %v52_v6 = vadd.f32 %v105_v4, %v51_v5 }
  0x89   :  { %v101_v7 = vmul.f32 -1.442695, %v52_v6 }
  0x8b   :  { %106 = vpow2.f32 %v101_v7 }
  0x8e   :  { %v53_v8 = vpop.f32.mrf.mxu0 }
  0x91   :  { %v107_v9 = vpop.eup %106 }
  0x92   :  { %v58_v10 = vadd.f32 1.0, %v107_v9 }
  0x94   :  { %108 = vrcp.f32 %v58_v10  ;;  %v70_v14 = vand.u32 2147483648, %v58_v10  ;;  %v68_v16 = vand.u32 2147483647, %v58_v10  ;;  %vm64_vm2 = vweird.f32 %v58_v10 }
  0x96   :  { %v71_v18 = vor.u32 1.1754944e-38, %v70_v14  ;;  %vm69_vm5 = vcmp.eq.f32.partialorder %v68_v16, 8.507059e+37 }
  0x9a   :  { %v109_v11 = vpop.eup %108 }
  0x9b   :  { %v60_v12 = vmul.f32 %v109_v11, %v58_v10  ;;  %vm65_vm1 = vweird.f32 %v109_v11 }
  0x9c   :  { %vm66_vm3 = vmor %vm64_vm2, %vm65_vm1 }
  0x9d   :  { %v61_v13 = vsub.f32 1.0, %v60_v12 }
  0x9f   :  { %v62_v15 = vmul.f32 %v109_v11, %v61_v13 }
  0xa1   :  { %v63_v17 = vadd.f32 %v109_v11, %v62_v15 }
  0xa3   :  { %v67_v19 = vsel %vm66_vm3, %v109_v11, %v63_v17 }
  0xa4   :  { %v72_v20 = vsel %vm69_vm5, %v71_v18, %v67_v19 }
  0xa5   :  { %75 = vst.msk [vmem:[#allocation2] sm:$0xff] %vm74_vm4, %v72_v20 }
  0xa6   :  { %86 = dma.vmem_to_hbm [thread:$0]  %s82_s1, 128, %s84_s2, [#allocation3]  }
  0xa7   :  { %134 = dma.done.wait [#allocation3], 128  }
  0xa8   :  { %135 = vsyncadd [#allocation3], 4294967168 }
  0xa9   :  { %91 = vsyncpa [#allocation3], 1 }

</bundles_post_ra>
